<compile_context>
chip_gen: v6e
topology: v6e:2x2x1
jax: 0.10.0
libtpu: 0.0.40
codegen_flags: <defaults>
</compile_context>

<pallas_src>
import jax
import jax.numpy as jnp
from jax import lax
from jax.experimental import pallas as pl
from jax.experimental.pallas import tpu as pltpu

IN_FEATURES = 4
HIDDEN = 128
N_ACTIONS = 2
HEAD_ROWS = 8          # fused-head weights padded to 8 sublanes (rows 3-7 zero)
OUT_ROWS = 3           # packed output rows: [p0, p1, value]


def policy_kernel(xt_ref, w1b1t_ref, whbht_ref, out_ref):
    # affine1 + ReLU, bias folded into the matmul via the ones row of xt:
    #   h = relu([W1^T | b1] @ [x^T ; 1]) -> [HIDDEN, tb]   (batch on lanes)
    h = jnp.dot(w1b1t_ref[...], xt_ref[...], preferred_element_type=jnp.float32)
    h = jnp.maximum(h, 0.0)

    # Fused heads: single matmul producing [8, tb]
    #   rows 0,1 = action scores, row 2 = state value, rows 3-7 = 0 (zero weights)
    wh = whbht_ref[:, 0:HIDDEN]                    # [8, 128]
    bh = whbht_ref[:, HIDDEN:HIDDEN + 1]           # [8, 1] (broadcast over batch lanes)
    s = jnp.dot(wh, h, preferred_element_type=jnp.float32) + bh   # [8, tb]

    # 2-class softmax via the sigmoid identity (numerically stable, XLU-free,
    # full-lane-width exp on the EUP):
    #   p0 = 1 / (1 + exp(s1 - s0)),  p1 = 1 - p0
    e = jnp.exp(s[1:2, :] - s[0:1, :])             # [1, tb]
    p0 = 1.0 / (1.0 + e)
    p1 = 1.0 - p0
    v = s[2:3, :]                                  # [1, tb]

    # Assemble the lane-dense packed output [3, tb] with VPU selects only.
    row = lax.broadcasted_iota(jnp.int32, (OUT_ROWS, s.shape[1]), 0)
    out = jnp.where(row == 0, p0, jnp.where(row == 1, p1, v))
    out_ref[...] = out.astype(out_ref.dtype)


def _choose_tile(batch, block_b):
    """Batch tile (lane dim).  Full array when tiny; otherwise a multiple of 128
    lanes with at least 2 grid steps so v7x can shard batch tiles across its
    two TensorCores; capped at block_b."""
    if batch <= 128:
        return batch                                # single block == full array
    half = pl.cdiv(batch, 2)
    tb = ((half + 127) // 128) * 128                # lane multiple, >= 2 tiles
    return min(block_b, tb)


def policy_forward(x, packed_params, *, block_b=16 * 1024):
    """x: [B, 4] float32. Returns (action_probs [B, 2], state_values [B, 1])."""
    w1b1t, whbht = packed_params
    B = x.shape[0]

    # Batch-on-lanes layout + bias-folding ones row (layout plumbing, one pass).
    xt = jnp.concatenate([x.T, jnp.ones((1, B), x.dtype)], axis=0)   # [5, B]

    tb = _choose_tile(B, block_b)
    grid = (pl.cdiv(B, tb),)

    cost = pl.CostEstimate(
        flops=2 * B * ((IN_FEATURES + 1) * HIDDEN + HIDDEN * HEAD_ROWS),
        transcendentals=B,
        bytes_accessed=4 * (B * (IN_FEATURES + 1 + OUT_ROWS)
                            + w1b1t.size + whbht.size),
    )

    out = pl.pallas_call(
        policy_kernel,
        out_shape=jax.ShapeDtypeStruct((OUT_ROWS, B), jnp.float32),
        grid_spec=pltpu.PrefetchScalarGridSpec(
            num_scalar_prefetch=0,
            grid=grid,
            in_specs=[
                pl.BlockSpec((IN_FEATURES + 1, tb), lambda i: (0, i)),  # batch tile of x^T
                pl.BlockSpec(w1b1t.shape, lambda i: (0, 0)),            # resident [128,5]
                pl.BlockSpec(whbht.shape, lambda i: (0, 0)),            # resident [8,129]
            ],
            out_specs=pl.BlockSpec((OUT_ROWS, tb), lambda i: (0, i)),
        ),
        compiler_params=pltpu.CompilerParams(
            dimension_semantics=("parallel",),       # shard batch tiles across TCs (v7x)
            vmem_limit_bytes=32 * 1024 * 1024,
        ),
        cost_estimate=cost,
    )(xt, w1b1t, whbht)

    probs = out[0:N_ACTIONS, :].T                    # [B, 2]
    values = out[N_ACTIONS:N_ACTIONS + 1, :].T       # [B, 1]
    return probs, values


def init_params(key):
    """Deterministic init mimicking PyTorch nn.Linear default:
    U(-1/sqrt(fan_in), 1/sqrt(fan_in)) for weight and bias.
    Weights stored as [in, out] (transposed vs. PyTorch's [out, in])."""
    def linear(key, fan_in, fan_out):
        kw, kb = jax.random.split(key)
        bound = 1.0 / jnp.sqrt(jnp.float32(fan_in))
        w = jax.random.uniform(kw, (fan_in, fan_out), jnp.float32, -bound, bound)
        b = jax.random.uniform(kb, (1, fan_out), jnp.float32, -bound, bound)
        return w, b

    k1, k2, k3 = jax.random.split(key, 3)
    w1, b1 = linear(k1, IN_FEATURES, HIDDEN)   # affine1
    wa, ba = linear(k2, HIDDEN, N_ACTIONS)     # action_head
    wv, bv = linear(k3, HIDDEN, 1)             # value_head
    return (w1, b1, wa, ba, wv, bv)


def pack_params(params):
    """One-time packing into the transposed (batch-on-lanes) kernel layout."""
    w1, b1, wa, ba, wv, bv = params
    # [W1 ; b1]^T -> [128, 5]; column 4 multiplies the ones row of x^T.
    w1b1t = jnp.concatenate([w1, b1], axis=0).T                        # [128, 5]
    # Fused heads (action 2 cols + value 1 col), bias appended as column 128,
    # transposed and sublane-padded to 8 rows (rows 3-7 zero).
    w_heads = jnp.concatenate([wa, wv], axis=1)                        # [128, 3]
    b_heads = jnp.concatenate([ba, bv], axis=1)                        # [1, 3]
    whbht = jnp.concatenate([w_heads, b_heads], axis=0).T              # [3, 129]
    whbht = jnp.pad(whbht, ((0, HEAD_ROWS - whbht.shape[0]), (0, 0)))  # [8, 129]
    return w1b1t, whbht


# TODO(synk): saved_actions / rewards buffers and Categorical sampling belong to
# the training loop, not the forward pass, so they are not part of the kernel.

if __name__ == "__main__":
    key = jax.random.PRNGKey(0)
    kx, kp = jax.random.split(key)

    params = init_params(kp)
    packed = pack_params(params)
    w1, b1, wa, ba, wv, bv = params

    # Small CartPole-like batch: single-block path.
    batch = 8
    x = jax.random.normal(kx, (batch, IN_FEATURES), jnp.float32)
    probs, values = jax.block_until_ready(policy_forward(x, packed))

    h_ref = jnp.maximum(x @ w1 + b1, 0.0)
    probs_ref = jax.nn.softmax(h_ref @ wa + ba, axis=1)
    values_ref = h_ref @ wv + bv
    assert probs.shape == (batch, N_ACTIONS) and values.shape == (batch, 1)
    assert jnp.allclose(jnp.sum(probs, axis=1), 1.0, atol=1e-5)
    assert jnp.allclose(probs, probs_ref, atol=1e-5)
    assert jnp.allclose(values, values_ref, atol=1e-5)

    # Also exercise the tiled (grid > 1, partial last block) path.
    batch2 = 384
    x2 = jax.random.normal(kx, (batch2, IN_FEATURES), jnp.float32)
    probs2, values2 = jax.block_until_ready(policy_forward(x2, packed))
    h2 = jnp.maximum(x2 @ w1 + b1, 0.0)
    assert jnp.allclose(probs2, jax.nn.softmax(h2 @ wa + ba, axis=1), atol=1e-5)
    assert jnp.allclose(values2, h2 @ wv + bv, atol=1e-5)

    print("KERNEL_OK")
</pallas_src>

<mosaic_0001>
module attributes {stable_mosaic.version = 11 : i64} {
  func.func @policy_kernel(%arg0: i32, %arg1: memref<5x8xf32, #tpu.memory_space<vmem>>, %arg2: memref<128x5xf32, #tpu.memory_space<vmem>>, %arg3: memref<8x129xf32, #tpu.memory_space<vmem>>, %arg4: memref<3x8xf32, #tpu.memory_space<vmem>>) attributes {dimension_semantics = [#tpu.dimension_semantics<parallel>], iteration_bounds = array<i64: 1>, scalar_prefetch = 0 : i64, scratch_operands = 0 : i64, tpu.core_type = #tpu.core_type<tc>, window_params = [{transform_indices = @transform_0, window_bounds = array<i64: 5, 8>}, {pipeline_mode = #tpu.pipeline_mode<synchronous>, transform_indices = @transform_1, window_bounds = array<i64: 128, 5>}, {pipeline_mode = #tpu.pipeline_mode<synchronous>, transform_indices = @transform_2, window_bounds = array<i64: 8, 129>}, {transform_indices = @transform_3, window_bounds = array<i64: 3, 8>}]} {
    %c0 = arith.constant 0 : index
    %c0_0 = arith.constant 0 : index
    %0 = vector.load %arg2[%c0, %c0_0] : memref<128x5xf32, #tpu.memory_space<vmem>>, vector<128x5xf32>
    %c0_1 = arith.constant 0 : index
    %c0_2 = arith.constant 0 : index
    %1 = vector.load %arg1[%c0_1, %c0_2] : memref<5x8xf32, #tpu.memory_space<vmem>>, vector<5x8xf32>
    %cst = arith.constant dense<0.000000e+00> : vector<128x8xf32>
    %2 = tpu.matmul %0, %1, %cst {dimension_numbers = #tpu.dot_dimension_numbers<[1], [0], [0], [1], [0, 0, 1, 1], [], []>} : vector<128x5xf32>, vector<5x8xf32>, vector<128x8xf32> -> vector<128x8xf32>
    %cst_3 = arith.constant 0.000000e+00 : f32
    %3 = vector.broadcast %cst_3 : f32 to vector<128x8xf32>
    %4 = arith.maximumf %2, %3 : vector<128x8xf32>
    %c0_4 = arith.constant 0 : index
    %c0_5 = arith.constant 0 : index
    %5 = vector.load %arg3[%c0_4, %c0_5] : memref<8x129xf32, #tpu.memory_space<vmem>>, vector<8x128xf32>
    %c0_6 = arith.constant 0 : index
    %c128 = arith.constant 128 : index
    %6 = vector.load %arg3[%c0_6, %c128] : memref<8x129xf32, #tpu.memory_space<vmem>>, vector<8x1xf32>
    %cst_7 = arith.constant dense<0.000000e+00> : vector<8x8xf32>
    %7 = tpu.matmul %5, %4, %cst_7 {dimension_numbers = #tpu.dot_dimension_numbers<[1], [0], [0], [1], [0, 0, 1, 1], [], []>} : vector<8x128xf32>, vector<128x8xf32>, vector<8x8xf32> -> vector<8x8xf32>
    %8 = vector.broadcast %6 : vector<8x1xf32> to vector<8x8xf32>
    %9 = arith.addf %7, %8 : vector<8x8xf32>
    %10 = vector.extract_strided_slice %9 {offsets = [1, 0], sizes = [1, 8], strides = [1, 1]} : vector<8x8xf32> to vector<1x8xf32>
    %11 = vector.extract_strided_slice %9 {offsets = [0, 0], sizes = [1, 8], strides = [1, 1]} : vector<8x8xf32> to vector<1x8xf32>
    %12 = arith.subf %10, %11 : vector<1x8xf32>
    %13 = math.exp %12 : vector<1x8xf32>
    %cst_8 = arith.constant 1.000000e+00 : f32
    %14 = vector.broadcast %cst_8 : f32 to vector<1x8xf32>
    %15 = arith.addf %14, %13 : vector<1x8xf32>
    %cst_9 = arith.constant 1.000000e+00 : f32
    %16 = vector.broadcast %cst_9 : f32 to vector<1x8xf32>
    %17 = arith.divf %16, %15 : vector<1x8xf32>
    %cst_10 = arith.constant 1.000000e+00 : f32
    %18 = vector.broadcast %cst_10 : f32 to vector<1x8xf32>
    %19 = arith.subf %18, %17 : vector<1x8xf32>
    %20 = vector.extract_strided_slice %9 {offsets = [2, 0], sizes = [1, 8], strides = [1, 1]} : vector<8x8xf32> to vector<1x8xf32>
    %21 = tpu.iota {dimensions = array<i32: 0>} : vector<3x8xi32>
    %c0_i32 = arith.constant 0 : i32
    %22 = vector.broadcast %c0_i32 : i32 to vector<3x8xi32>
    %23 = arith.cmpi eq, %21, %22 : vector<3x8xi32>
    %c1_i32 = arith.constant 1 : i32
    %24 = vector.broadcast %c1_i32 : i32 to vector<3x8xi32>
    %25 = arith.cmpi eq, %21, %24 : vector<3x8xi32>
    %26 = vector.shape_cast %19 : vector<1x8xf32> to vector<1x8xf32>
    %27 = vector.broadcast %26 : vector<1x8xf32> to vector<3x8xf32>
    %28 = vector.shape_cast %20 : vector<1x8xf32> to vector<1x8xf32>
    %29 = vector.broadcast %28 : vector<1x8xf32> to vector<3x8xf32>
    %30 = arith.select %25, %27, %29 : vector<3x8xi1>, vector<3x8xf32>
    %31 = vector.shape_cast %17 : vector<1x8xf32> to vector<1x8xf32>
    %32 = vector.broadcast %31 : vector<1x8xf32> to vector<3x8xf32>
    %33 = arith.select %23, %32, %30 : vector<3x8xi1>, vector<3x8xf32>
    %c0_11 = arith.constant 0 : index
    %c0_12 = arith.constant 0 : index
    %34 = vector.load %arg4[%c0_11, %c0_12] : memref<3x8xf32, #tpu.memory_space<vmem>>, vector<3x8xf32>
    tpu.vector_store %arg4[%c0_11, %c0_12], %33 {strides = array<i32>} : memref<3x8xf32, #tpu.memory_space<vmem>>, vector<3x8xf32>,
    return
  }
  func.func @transform_0(%arg0: i32) -> (i32, i32) {
    %c0_i32 = arith.constant 0 : i32
    %c0_i32_0 = arith.constant 0 : i32
    return %c0_i32, %arg0 : i32, i32
  }
  func.func @transform_1(%arg0: i32) -> (i32, i32) {
    %c0_i32 = arith.constant 0 : i32
    %c0_i32_0 = arith.constant 0 : i32
    %c0_i32_1 = arith.constant 0 : i32
    return %c0_i32, %c0_i32_0 : i32, i32
  }
  func.func @transform_2(%arg0: i32) -> (i32, i32) {
    %c0_i32 = arith.constant 0 : i32
    %c0_i32_0 = arith.constant 0 : i32
    %c0_i32_1 = arith.constant 0 : i32
    return %c0_i32, %c0_i32_0 : i32, i32
  }
  func.func @transform_3(%arg0: i32) -> (i32, i32) {
    %c0_i32 = arith.constant 0 : i32
    %c0_i32_0 = arith.constant 0 : i32
    return %c0_i32, %arg0 : i32, i32
  }
}

</mosaic_0001>

<bundles_post_ra>
// kernel: tpu_custom_call.1
= control target key start
LH: loop header
LB: loop body
LE: loop exit
PB: predicated region body
PF: predicated region fallthrough
CT: control target
= control target key end

     0   :  { %vm81_vm0 = vcmask 1044480   ;;  %vm32_vm1 = vcmask 39936   ;;  %s627_s0 = inlined_call_operand.vmem [shape: f32[5,8], index: 0, kind: input, shape index: {}]   ;;  %s628_s1 = inlined_call_operand.vmem [shape: f32[128,5], index: 1, kind: input, shape index: {}]   ;;  %s629_s2 = inlined_call_operand.vmem [shape: f32[8,129], index: 2, kind: input, shape index: {}]   ;;  %s630_s3 = inlined_call_operand.hbm [shape: f32[3,8], index: 3, kind: output, shape index: {}]  }
   0x1   :  { %v31_v0 = vld [vmem:[%s627_s0] sm:$0x1f]  ;;  %v16_v2 = vld [vmem:[%s628_s1 + $0x8] sm:$0xff]  ;;  %v17_v3 = vld [vmem:[%s628_s1 + $0x10] sm:$0xff] }
   0x2   :  { %v15_v1 = vld [vmem:[%s628_s1] sm:$0xff]  ;;  %418 = vmatprep.subr.msk.mxu0 %vm81_vm0, %v31_v0  ;;  %v18_v4 = vld [vmem:[%s628_s1 + $0x18] sm:$0xff] }
   0x3   :  { %420 = vmatprep.mubr.msk.f32.mxu0 %vm32_vm1, %v15_v1  ;;  %419 = vmatpush3.msk.msra.mxu0 %vm81_vm0, %v31_v0  ;;  %v19_v5 = vld [vmem:[%s628_s1 + $0x20] sm:$0xff] }
   0x4   :  { %421 = vmatmul.mubr.msk.f32.vlgmr.msra.gmra.mxu0 %vm32_vm1, %v16_v2 }
   0x5   :  { %423 = vmatprep.mubr.msk.f32.mxu0 %vm32_vm1, %v17_v3 }
   0x6   :  { %8 = vsyncpa [#allocation3], 0  ;;  %v20_v6 = vld [vmem:[%s628_s1 + $0x28] sm:$0xff]  ;;  %v21_v7 = vld [vmem:[%s628_s1 + $0x30] sm:$0xff]  ;;  %v510_v17 = vmov 0.0   ;;  %vm511_vm2 = vmmov 0   ;;  %v333_v62 = vlaneseq }
   0x7   :  { %v22_v8 = vld [vmem:[%s628_s1 + $0x38] sm:$0xff]  ;;  %v23_v9 = vld [vmem:[%s628_s1 + $0x40] sm:$0xff]  ;;  %v24_v10 = vld [vmem:[%s628_s1 + $0x48] sm:$0xff]  ;;  %444 = vmatprep.subr.mxu1 %v510_v17  ;;  %476 = vmatprep.mubr.msk.f32.mxu1 %vm511_vm2, %v510_v17  ;;  %v512_v19 = vmov 0   ;;  %vm351_vm5 = vcmask 59392  }
   0x8   :  { %424 = vmatmul.mubr.msk.f32.gmra.mxu0 %vm32_vm1, %v18_v4  ;;  %v25_v11 = vld [vmem:[%s628_s1 + $0x50] sm:$0xff]  ;;  %v26_v12 = vld [vmem:[%s628_s1 + $0x58] sm:$0xff]  ;;  %v27_v13 = vld [vmem:[%s628_s1 + $0x60] sm:$0xff]  ;;  %483 = vset.pattern.permute.xlu0 %v512_v19  ;;  %v334_v63 = vshrl.u32 %v333_v62, 7 }
   0x9   :  { %426 = vmatprep.mubr.msk.f32.mxu0 %vm32_vm1, %v19_v5  ;;  %v28_v14 = vld [vmem:[%s628_s1 + $0x68] sm:$0xff]  ;;  %v29_v15 = vld [vmem:[%s628_s1 + $0x70] sm:$0xff]  ;;  %v30_v16 = vld [vmem:[%s628_s1 + $0x78] sm:$0xff] }
   0xa   :  { %v247_v18 = vld [vmem:[%s629_s2 + $0x8] sm:$0xff]  ;;  %v246_v52 = vld [vmem:[%s629_s2] sm:$0xff]  ;;  %v343_v0 = vsub.s32 2, %v334_v63  ;;  %v339_v2 = vsub.s32 1, %v334_v63  ;;  %vm336_vm3 = vcmp.eq.s32.totalorder %v334_v63, 1  ;;  %s513_s2 = smov [#allocation2]  }
   0xb   :  { %250 = vperm.xlu0 %483, %v247_v18   ;;  %s359_s20 = sshll.u32 %s513_s2, 4  ;;  %vm335_vm4 = vcmp.eq.s32.totalorder %v334_v63, 0  ;;  %s360_s20 = int_to_ptr.vmem [resolvable:$true] %s359_s20 }
   0xc   :  { %427 = vmatmul.mubr.msk.f32.gmra.mxu0 %vm32_vm1, %v20_v6  ;;  %s488_s21 = scalar_lea.vmem %s360_s20, 64  ;;  %p493_p1 = scmp.lt.s32.totalorder %s360_s20, %s360_s20 }
   0xd   :  { %429 = vmatprep.mubr.msk.f32.mxu0 %vm32_vm1, %v21_v7  ;;  %p489_p0 = scmp.ne.s32.totalorder %s360_s20, %s488_s21  ;;  %p494_p2 = scmp.lt.s32.totalorder %s488_s21, %s488_s21 }
   0xf   :  { %p495_p3 = por %p494_p2, %p493_p1 }
  0x10   :  { %430 = vmatmul.mubr.msk.f32.gmra.mxu0 %vm32_vm1, %v22_v8 }
  0x11   :  { %432 = vmatprep.mubr.msk.f32.mxu0 %vm32_vm1, %v23_v9  ;;  %p496_p4 = pnand %p495_p3, %p489_p0 }
  0x14   :  { %433 = vmatmul.mubr.msk.f32.gmra.mxu0 %vm32_vm1, %v24_v10 }
  0x15   :  { %435 = vmatprep.mubr.msk.f32.mxu0 %vm32_vm1, %v25_v11 }
  0x18   :  { %436 = vmatmul.mubr.msk.f32.gmra.mxu0 %vm32_vm1, %v26_v12 }
  0x19   :  { %438 = vmatprep.mubr.msk.f32.mxu0 %vm32_vm1, %v27_v13 }
  0x1c   :  { %439 = vmatmul.mubr.msk.f32.gmra.mxu0 %vm32_vm1, %v28_v14 }
  0x1d   :  { %441 = vmatprep.mubr.msk.f32.mxu0 %vm32_vm1, %v29_v15 }
  0x20   :  { %442 = vmatmul.mubr.msk.f32.gmra.mxu0 %vm32_vm1, %v30_v16 }
  0x86   :  { %v251_v53 = vpop.permute.xlu0 %250 }
  0xc4   :  { %v422_v20 = vpop.f32.mrf.mxu0 }
  0xc5   :  { %v231_v50 = vmax.f32 %v422_v20, 0.0 }
  0xc6   :  { %v151_v21 = vpop.f32.mrf.mxu0 }
  0xc7   :  { %v230_v51 = vmax.f32 %v151_v21, 0.0 }
  0xc8   :  { %v425_v22 = vpop.f32.mrf.mxu0 }
  0xc9   :  { %v233_v48 = vmax.f32 %v425_v22, 0.0 }
  0xca   :  { %v161_v23 = vpop.f32.mrf.mxu0 }
  0xcb   :  { %v232_v49 = vmax.f32 %v161_v23, 0.0 }
  0xcc   :  { %v428_v24 = vpop.f32.mrf.mxu0 }
  0xcd   :  { %v235_v46 = vmax.f32 %v428_v24, 0.0 }
  0xce   :  { %v171_v25 = vpop.f32.mrf.mxu0 }
  0xcf   :  { %v234_v47 = vmax.f32 %v171_v25, 0.0 }
  0xd0   :  { %v431_v26 = vpop.f32.mrf.mxu0 }
  0xd1   :  { %v237_v44 = vmax.f32 %v431_v26, 0.0 }
  0xd2   :  { %v181_v27 = vpop.f32.mrf.mxu0 }
  0xd3   :  { %v236_v45 = vmax.f32 %v181_v27, 0.0 }
  0xd4   :  { %v434_v28 = vpop.f32.mrf.mxu0 }
  0xd5   :  { %v239_v42 = vmax.f32 %v434_v28, 0.0 }
  0xd6   :  { %v191_v29 = vpop.f32.mrf.mxu0 }
  0xd7   :  { %v238_v43 = vmax.f32 %v191_v29, 0.0 }
  0xd8   :  { %v437_v30 = vpop.f32.mrf.mxu0 }
  0xd9   :  { %v241_v40 = vmax.f32 %v437_v30, 0.0 }
  0xda   :  { %v201_v31 = vpop.f32.mrf.mxu0 }
  0xdb   :  { %v240_v41 = vmax.f32 %v201_v31, 0.0 }
  0xdc   :  { %v440_v32 = vpop.f32.mrf.mxu0 }
  0xdd   :  { %v243_v38 = vmax.f32 %v440_v32, 0.0 }
  0xde   :  { %v211_v33 = vpop.f32.mrf.mxu0 }
  0xdf   :  { %v242_v39 = vmax.f32 %v211_v33, 0.0 }
  0xe0   :  { %v443_v34 = vpop.f32.mrf.mxu0 }
  0xe1   :  { %v245_v35 = vmax.f32 %v443_v34, 0.0 }
  0xe2   :  { %v221_v36 = vpop.f32.mrf.mxu0 }
  0xe3   :  { %v244_v37 = vmax.f32 %v221_v36, 0.0  ;;  %445 = vmatpush3.msra.mxu1 %v245_v35 }
  0xe4   :  { %446 = vmatprep.subr.mxu1 %v510_v17 }
  0xe5   :  { %447 = vmatpush3.msra.mxu1 %v244_v37 }
  0xe6   :  { %448 = vmatprep.subr.mxu1 %v510_v17 }
  0xe7   :  { %449 = vmatpush3.msra.mxu1 %v243_v38 }
  0xe8   :  { %450 = vmatprep.subr.mxu1 %v510_v17 }
  0xe9   :  { %451 = vmatpush3.msra.mxu1 %v242_v39 }
  0xea   :  { %452 = vmatprep.subr.mxu1 %v510_v17 }
  0xeb   :  { %453 = vmatpush3.msra.mxu1 %v241_v40 }
  0xec   :  { %454 = vmatprep.subr.mxu1 %v510_v17 }
  0xed   :  { %455 = vmatpush3.msra.mxu1 %v240_v41 }
  0xee   :  { %456 = vmatprep.subr.mxu1 %v510_v17 }
  0xef   :  { %457 = vmatpush3.msra.mxu1 %v239_v42 }
  0xf0   :  { %458 = vmatprep.subr.mxu1 %v510_v17 }
  0xf1   :  { %459 = vmatpush3.msra.mxu1 %v238_v43 }
  0xf2   :  { %460 = vmatprep.subr.mxu1 %v510_v17 }
  0xf3   :  { %461 = vmatpush3.msra.mxu1 %v237_v44 }
  0xf4   :  { %462 = vmatprep.subr.mxu1 %v510_v17 }
  0xf5   :  { %463 = vmatpush3.msra.mxu1 %v236_v45 }
  0xf6   :  { %464 = vmatprep.subr.mxu1 %v510_v17 }
  0xf7   :  { %465 = vmatpush3.msra.mxu1 %v235_v46 }
  0xf8   :  { %466 = vmatprep.subr.mxu1 %v510_v17 }
  0xf9   :  { %467 = vmatpush3.msra.mxu1 %v234_v47 }
  0xfa   :  { %468 = vmatprep.subr.mxu1 %v510_v17 }
  0xfb   :  { %469 = vmatpush3.msra.mxu1 %v233_v48 }
  0xfc   :  { %470 = vmatprep.subr.mxu1 %v510_v17 }
  0xfd   :  { %471 = vmatpush3.msra.mxu1 %v232_v49 }
  0xfe   :  { %472 = vmatprep.subr.mxu1 %v510_v17 }
  0xff   :  { %473 = vmatpush3.msra.mxu1 %v231_v50 }
 0x100   :  { %474 = vmatprep.subr.mxu1 %v510_v17 }
 0x101   :  { %475 = vmatpush3.msra.mxu1 %v230_v51 }
 0x102   :  { %477 = vmatmul.mubr.f32.vlgmr.msra.gmra.mxu1 %v246_v52 }
 0x1c2   :  { %v319_v54 = vpop.f32.mrf.mxu1 }
 0x1c3   :  { %v320_v55 = vadd.f32 %v319_v54, %v251_v53 }
 0x1c4   :  { %v478_v56 = vpop.f32.mrf.mxu1 }
 0x1c5   :  { %v324_v57 = vrot.slane %v320_v55, 7  ;;  %v344_v4 = vrot.slane %v320_v55, %v343_v0 }
 0x1c7   :  { %v326_v58 = vsub.f32 %v320_v55, %v324_v57 }
 0x1c9   :  { %v327_v59 = vmul.f32 1.442695, %v326_v58 }
 0x1cb   :  { %484 = vpow2.f32 %v327_v59 }
 0x1d8   :  { %v485_v60 = vpop.eup %484 }
 0x1d9   :  { %v329_v61 = vadd.f32 1.0, %v485_v60 }
 0x1db   :  { %486 = vrcp.f32 %v329_v61 }
 0x1e8   :  { %v487_v1 = vpop.eup %486 }
 0x1e9   :  { %v332_v3 = vsub.f32 1.0, %v487_v1  ;;  %v349_v6 = vrot.slane %v487_v1, %v339_v2 }
 0x1eb   :  { %v340_v5 = vrot.slane %v332_v3, %v339_v2 }
 0x1ed   :  { %v345_v7 = vsel %vm336_vm3, %v340_v5, %v344_v4 }
 0x1ee   :  { %v350_v8 = vsel %vm335_vm4, %v349_v6, %v345_v7 }
 0x1ef   :  { %352 = vst.msk [vmem:[#allocation2] sm:$0x7] %vm351_vm5, %v350_v8 }
 0x1f0   :  { %499 = shalt.err (!%p496_p4)
}
 0x1f1   :  { %362 = dma.vmem_to_hbm [thread:$0]  %s360_s20, 64, %s630_s3, [#allocation3]  }
 0x1f2   :  { %508 = dma.done.wait [#allocation3], 64  }
 0x1f3   :  { %509 = vsyncadd [#allocation3], 4294967232 }
 0x1f4   :  { %366 = vsyncpa [#allocation3], 1 }

</bundles_post_ra>
